<compile_context>
chip_gen: v7x
topology: tpu7x:2x2x1
jax: 0.10.0
libtpu: 0.0.40
codegen_flags: <defaults>
</compile_context>

<pallas_src>
import functools

import jax
import jax.numpy as jnp
from jax.experimental import pallas as pl
from jax.experimental.pallas import tpu as pltpu


def _round_up(a, b):
    return (a + b - 1) // b * b


def _pad2(a, rows, cols):
    return jnp.pad(a, ((0, rows - a.shape[0]), (0, cols - a.shape[1])))


# ----------------------------- VMEM budgeting -------------------------------
def _vmem_budget_bytes():
    """Generation-aware scoped-VMEM budget (v5e/v6e: 128 MiB, v7x: 64 MiB)."""
    try:
        cap = int(pltpu.get_tpu_info().vmem_capacity_bytes)
    except Exception:
        cap = 64 * 1024 * 1024  # conservative (v7x-sized) fallback
    return min(cap * 3 // 4, 100 * 1024 * 1024)


def _pass2_vmem_bytes(tm, tk, eds, ep, dp):
    return (2 * tm * tk * 2          # x tile (bf16, double-buffered)
            + 2 * tm * ep * 4        # routing weights (f32)
            + 2 * tk * eds * 2       # expert weight tile (bf16)
            + 2 * eds * 4            # expert bias (f32)
            + 2 * tm * dp * 4        # output tile (f32)
            + tm * eds * 4)          # accumulator scratch (f32)


def _pass1_vmem_bytes(tm, tk, ep):
    return (2 * tm * tk * 4          # x tile (f32)
            + 2 * tk * ep * 4        # gate weight tile (f32)
            + 2 * tm * ep * 4        # noise (f32)
            + 2 * ep * 4             # gate bias
            + 2 * tm * ep * 4)       # logits out (f32)


def _choose_pass2_tiles(batch, dinp, eds, ep, dp, budget):
    bmax = _round_up(batch, 8)
    tm_cands = sorted({t for t in (512, 384, 256, 128, 64, 32, 16, 8,
                                   min(bmax, 512)) if t <= bmax}, reverse=True)
    tk_cands = [c for c in range(dinp, 0, -128) if dinp % c == 0]
    # 1) Prefer a fully VMEM-resident expert weight (tile_k == Dinp): the weight
    #    block index is then constant across the grid, so it is DMA'd once.
    for tm in tm_cands:
        if _pass2_vmem_bytes(tm, dinp, eds, ep, dp) <= budget:
            return tm, dinp
    # 2) Otherwise maximize the batch tile (amortizes weight re-streaming), then
    #    pick the largest K tile that still fits.
    for tm in tm_cands:
        for tk in tk_cands:
            if _pass2_vmem_bytes(tm, tk, eds, ep, dp) <= budget:
                return tm, tk
    # TODO(synk): for extremely large E*D also tile the expert-column axis.
    return tm_cands[-1], tk_cands[-1]


def _choose_pass1_tile_k(tm, dinp, ep, budget):
    for tk in (c for c in range(dinp, 0, -128) if dinp % c == 0):
        if _pass1_vmem_bytes(tm, tk, ep) <= budget:
            return tk
    return 128


# -------------------------- pass 1a: gate logits -----------------------------
def _gate_kernel(x_ref, gw_ref, gb_ref, noise_ref, logits_ref):
    k = pl.program_id(1)

    @pl.when(k == 0)
    def _():
        logits_ref[...] = jnp.zeros_like(logits_ref)

    # f32 gate matmul (small) accumulated directly into the resident out block.
    logits_ref[...] += jnp.dot(x_ref[...], gw_ref[...],
                               preferred_element_type=jnp.float32)

    @pl.when(k == pl.num_programs(1) - 1)
    def _():
        logits_ref[...] += gb_ref[...] + noise_ref[...]


# ------------------ pass 1b: GRN + softmax + top-k routing -------------------
def _routing_finalize_kernel(logits_ref, gamma_ref, beta_ref, w_out_ref, *,
                             batch, num_experts, topk, eps):
    logits = logits_ref[...]                                       # (Bp, Ep) f32
    bp, ep = logits.shape

    lane = jax.lax.broadcasted_iota(jnp.int32, (bp, ep), 1)
    lane_valid = lane < num_experts
    row = jax.lax.broadcasted_iota(jnp.int32, (bp, 1), 0)
    row_mask = (row < batch).astype(jnp.float32)

    # GRN over the expert axis; the batch-mean uses only the valid rows.
    logits = jnp.where(lane_valid, logits, 0.0)
    gx = jnp.sqrt(jnp.sum(logits * logits, axis=1, keepdims=True))  # (Bp, 1)
    mean_gx = jnp.sum(gx * row_mask, axis=0, keepdims=True) / batch
    nx = gx / (mean_gx + eps)
    logits = gamma_ref[...] * (logits * nx) + beta_ref[...]

    # softmax over the real experts (padded lanes -> -inf -> prob 0).
    logits = jnp.where(lane_valid, logits, -jnp.inf)
    m = jnp.max(logits, axis=-1, keepdims=True)
    e = jnp.exp(logits - m)
    probs = e / jnp.sum(e, axis=-1, keepdims=True)

    # top-k selection -> per-expert routing weights (0 for unselected),
    # lowest-index tie-break (matches torch.topk / lax.top_k).
    weights = jnp.zeros_like(probs)
    remaining = probs
    for _ in range(topk):
        mx = jnp.max(remaining, axis=-1, keepdims=True)
        is_max = remaining == mx
        first = jnp.min(jnp.where(is_max, lane, ep), axis=-1, keepdims=True)
        sel = lane == first
        weights = jnp.where(sel, probs, weights)
        remaining = jnp.where(sel, -jnp.inf, remaining)
    w_out_ref[...] = weights


# --------------------- pass 2: experts + weighted combine --------------------
def _expert_kernel(w_ref, x_ref, ew_ref, eb_ref, out_ref, acc_ref, *,
                   num_experts, d_pad):
    k = pl.program_id(1)

    @pl.when(k == 0)
    def _():
        acc_ref[...] = jnp.zeros_like(acc_ref)

    # bf16 MXU matmul, f32 accumulation into VMEM scratch.
    acc_ref[...] += jnp.dot(x_ref[...], ew_ref[...],
                            preferred_element_type=jnp.float32)

    @pl.when(k == pl.num_programs(1) - 1)
    def _():
        eo = acc_ref[...] + eb_ref[...]                 # (tm, E*Dp) f32
        w = w_ref[...]                                  # (tm, Ep)   f32
        # Unrolled VPU combine over static, 128-aligned per-expert lane stripes:
        # out = sum_e  routing_w[:, e] * expert_out[:, e-th Dp stripe]
        out = w[:, 0:1] * eo[:, 0:d_pad]
        for e in range(1, num_experts):
            out = out + w[:, e:e + 1] * eo[:, e * d_pad:(e + 1) * d_pad]
        out_ref[...] = out.astype(out_ref.dtype)


def moe_forward(x, noise, params, *, num_experts, output_dim, topk, eps=1e-6):
    gate_w, gate_b, exp_w, exp_b, gamma, beta = params
    B, Din = x.shape
    E, D = num_experts, output_dim

    f32, bf16 = jnp.float32, jnp.bfloat16

    # ---- padded sizes (multiples of the (8, 128) vreg tile) ----
    Ep = _round_up(E, 128)
    Dp = _round_up(D, 128)
    EDs = E * Dp                       # expert-major, per-expert stripe of Dp lanes
    Dinp = _round_up(Din, 128)         # pad K to 128, not to tile_k

    vmem_limit = _vmem_budget_bytes()
    tile_budget = int(vmem_limit * 0.9)

    tile_m, tile_k = _choose_pass2_tiles(B, Dinp, EDs, Ep, Dp, tile_budget)
    tile_k1 = _choose_pass1_tile_k(tile_m, Dinp, Ep, tile_budget)

    Bp = _round_up(B, tile_m)
    nm = Bp // tile_m
    nk = Dinp // tile_k
    nk1 = Dinp // tile_k1

    # ---- pad + cast operands ----
    x_f32 = _pad2(x.astype(f32), Bp, Dinp)
    x_bf16 = x_f32.astype(bf16)
    noise_p = _pad2(noise.astype(f32), Bp, Ep)
    gate_w_p = _pad2(gate_w.astype(f32), Dinp, Ep)
    gate_b_p = _pad2(gate_b.astype(f32), 1, Ep)
    gamma_p = _pad2(gamma.astype(f32), 1, Ep)
    beta_p = _pad2(beta.astype(f32), 1, Ep)

    # Expert weights/bias: (Din, E*D) -> (Dinp, E*Dp); each expert's D columns are
    # padded to a 128-lane stripe so the combine can use static lane slices.
    exp_w_r = jnp.pad(exp_w.astype(f32).reshape(Din, E, D),
                      ((0, Dinp - Din), (0, 0), (0, Dp - D)))
    exp_w_p = exp_w_r.reshape(Dinp, EDs).astype(bf16)
    exp_b_r = jnp.pad(exp_b.astype(f32).reshape(1, E, D),
                      ((0, 0), (0, 0), (0, Dp - D)))
    exp_b_p = exp_b_r.reshape(1, EDs)

    # ---- pass 1a: gate logits (batch-parallel, K-reduction) ----
    logits = pl.pallas_call(
        _gate_kernel,
        out_shape=jax.ShapeDtypeStruct((Bp, Ep), f32),
        grid_spec=pltpu.PrefetchScalarGridSpec(
            num_scalar_prefetch=0,
            grid=(nm, nk1),
            in_specs=[
                pl.BlockSpec((tile_m, tile_k1), lambda m, k: (m, k)),  # x (f32)
                pl.BlockSpec((tile_k1, Ep), lambda m, k: (k, 0)),      # gate W
                pl.BlockSpec((1, Ep), lambda m, k: (0, 0)),            # gate bias
                pl.BlockSpec((tile_m, Ep), lambda m, k: (m, 0)),       # noise
            ],
            out_specs=pl.BlockSpec((tile_m, Ep), lambda m, k: (m, 0)),
        ),
        compiler_params=pltpu.CompilerParams(
            dimension_semantics=("parallel", "arbitrary"),
            vmem_limit_bytes=vmem_limit),
    )(x_f32, gate_w_p, gate_b_p, noise_p)

    # ---- pass 1b: GRN + softmax + top-k on the tiny (Bp, Ep) logits ----
    # TODO(synk): for very large batches, split the GRN batch-mean into a two-pass
    # partial-sum kernel instead of holding all rows in one VMEM block.
    routing = pl.pallas_call(
        functools.partial(_routing_finalize_kernel, batch=B, num_experts=E,
                          topk=topk, eps=eps),
        out_shape=jax.ShapeDtypeStruct((Bp, Ep), f32),
        grid_spec=pltpu.PrefetchScalarGridSpec(
            num_scalar_prefetch=0,
            grid=(1,),
            in_specs=[
                pl.BlockSpec((Bp, Ep), lambda i: (0, 0)),              # logits
                pl.BlockSpec((1, Ep), lambda i: (0, 0)),               # gamma
                pl.BlockSpec((1, Ep), lambda i: (0, 0)),               # beta
            ],
            out_specs=pl.BlockSpec((Bp, Ep), lambda i: (0, 0)),
        ),
        compiler_params=pltpu.CompilerParams(
            dimension_semantics=("arbitrary",),
            vmem_limit_bytes=vmem_limit),
    )(logits, gamma_p, beta_p)

    # ---- pass 2: fused experts + per-expert lane-stripe combine ----
    # When tile_k == Dinp the expert-weight block index is constant over the whole
    # grid, so the bf16 weight is DMA'd from HBM exactly once (VMEM-resident).
    out_p = pl.pallas_call(
        functools.partial(_expert_kernel, num_experts=E, d_pad=Dp),
        out_shape=jax.ShapeDtypeStruct((Bp, Dp), f32),
        grid_spec=pltpu.PrefetchScalarGridSpec(
            num_scalar_prefetch=0,
            grid=(nm, nk),
            in_specs=[
                pl.BlockSpec((tile_m, Ep), lambda m, k: (m, 0)),       # routing w
                pl.BlockSpec((tile_m, tile_k), lambda m, k: (m, k)),   # x (bf16)
                pl.BlockSpec((tile_k, EDs), lambda m, k: (k, 0)),      # experts W
                pl.BlockSpec((1, EDs), lambda m, k: (0, 0)),           # experts b
            ],
            out_specs=pl.BlockSpec((tile_m, Dp), lambda m, k: (m, 0)),
            scratch_shapes=[pltpu.VMEM((tile_m, EDs), f32)],
        ),
        compiler_params=pltpu.CompilerParams(
            dimension_semantics=("parallel", "arbitrary"),
            vmem_limit_bytes=vmem_limit),
    )(routing, x_bf16, exp_w_p, exp_b_p)

    return out_p[:B, :D]


def moe_reference(x, noise, params, *, num_experts, output_dim, topk, eps=1e-6,
                  expert_mxu_dtype=None):
    """Pure-JAX reference mirroring the PyTorch forward (gate in f32)."""
    gate_w, gate_b, exp_w, exp_b, gamma, beta = params
    hp = jax.lax.Precision.HIGHEST
    logits = jnp.dot(x, gate_w, precision=hp) + gate_b + noise
    gx = jnp.linalg.norm(logits, axis=1, keepdims=True)
    nx = gx / (jnp.mean(gx, axis=0, keepdims=True) + eps)
    logits = gamma * (logits * nx) + beta
    probs = jax.nn.softmax(logits, axis=-1)
    top_p, top_i = jax.lax.top_k(probs, topk)
    if expert_mxu_dtype is not None:   # mirror the kernel's bf16 MXU operands
        xe = x.astype(expert_mxu_dtype).astype(jnp.float32)
        we = exp_w.astype(expert_mxu_dtype).astype(jnp.float32)
    else:
        xe, we = x, exp_w
    eo = (jnp.dot(xe, we, precision=hp) + exp_b).reshape(-1, num_experts,
                                                         output_dim)
    sel = jnp.take_along_axis(eo, top_i[..., None], axis=1)
    return jnp.einsum('bk,bkd->bd', top_p, sel)


if __name__ == "__main__":
    # Small, deterministic problem
    B, INPUT_DIM, OUTPUT_DIM, NUM_EXPERTS, TOPK = 8, 32, 16, 8, 2
    NOISE_STD = 0.1

    key = jax.random.PRNGKey(0)
    kx, kn, kgw, kgb, kew, kg = jax.random.split(key, 6)

    x = jax.random.normal(kx, (B, INPUT_DIM), jnp.float32)
    # noise_std > 0 -> gaussian noise on the gate logits (supplied deterministically
    # as an input so kernel and reference see identical noise).
    noise = jax.random.normal(kn, (B, NUM_EXPERTS), jnp.float32) * NOISE_STD

    # gate Linear: default torch init ~ U(-1/sqrt(fan_in), 1/sqrt(fan_in))
    lim_g = 1.0 / (INPUT_DIM ** 0.5)
    gate_w = jax.random.uniform(kgw, (INPUT_DIM, NUM_EXPERTS), jnp.float32,
                                -lim_g, lim_g)
    gate_b = jax.random.uniform(kgb, (1, NUM_EXPERTS), jnp.float32, -lim_g, lim_g)

    # experts Linear: xavier_uniform_ on weight, zero bias
    fan_out = OUTPUT_DIM * NUM_EXPERTS
    lim_e = (6.0 / (INPUT_DIM + fan_out)) ** 0.5
    exp_w = jax.random.uniform(kew, (INPUT_DIM, fan_out), jnp.float32,
                               -lim_e, lim_e)
    exp_b = jnp.zeros((1, fan_out), jnp.float32)

    # GRN params
    gamma = jnp.ones((1, NUM_EXPERTS), jnp.float32)
    beta = jnp.zeros((1, NUM_EXPERTS), jnp.float32)

    params = (gate_w, gate_b, exp_w, exp_b, gamma, beta)

    fwd = jax.jit(functools.partial(moe_forward, num_experts=NUM_EXPERTS,
                                    output_dim=OUTPUT_DIM, topk=TOPK))
    out = jax.block_until_ready(fwd(x, noise, params))
    assert out.shape == (B, OUTPUT_DIM)

    # Gate path is f32 in both kernel and reference; the expert matmul uses bf16
    # MXU operands with f32 accumulation, so the reference sees the same
    # bf16-rounded expert operands.  Remaining difference is f32 sum-order noise.
    ref = moe_reference(x, noise, params, num_experts=NUM_EXPERTS,
                        output_dim=OUTPUT_DIM, topk=TOPK,
                        expert_mxu_dtype=jnp.bfloat16)
    assert jnp.allclose(out, ref, atol=2e-3, rtol=2e-3), "mismatch vs reference"

    print("KERNEL_OK")
</pallas_src>

<mosaic_0001>
module attributes {stable_mosaic.version = 11 : i64} {
  func.func @_routing_finalize_kernel(%arg0: i32, %arg1: memref<8x128xf32, #tpu.memory_space<vmem>>, %arg2: memref<1x128xf32, #tpu.memory_space<vmem>>, %arg3: memref<1x128xf32, #tpu.memory_space<vmem>>, %arg4: memref<8x128xf32, #tpu.memory_space<vmem>>) attributes {dimension_semantics = [#tpu.dimension_semantics<arbitrary>], iteration_bounds = array<i64: 1>, scalar_prefetch = 0 : i64, scratch_operands = 0 : i64, tpu.core_type = #tpu.core_type<tc>, window_params = [{pipeline_mode = #tpu.pipeline_mode<synchronous>, transform_indices = @transform_0, window_bounds = array<i64: 8, 128>}, {pipeline_mode = #tpu.pipeline_mode<synchronous>, transform_indices = @transform_1, window_bounds = array<i64: 1, 128>}, {pipeline_mode = #tpu.pipeline_mode<synchronous>, transform_indices = @transform_2, window_bounds = array<i64: 1, 128>}, {pipeline_mode = #tpu.pipeline_mode<synchronous>, transform_indices = @transform_3, window_bounds = array<i64: 8, 128>}]} {
    %c0 = arith.constant 0 : index
    %c0_0 = arith.constant 0 : index
    %0 = vector.load %arg1[%c0, %c0_0] : memref<8x128xf32, #tpu.memory_space<vmem>>, vector<8x128xf32>
    %1 = tpu.iota {dimensions = array<i32: 1>} : vector<8x128xi32>
    %c8_i32 = arith.constant 8 : i32
    %2 = vector.broadcast %c8_i32 : i32 to vector<8x128xi32>
    %3 = arith.cmpi slt, %1, %2 : vector<8x128xi32>
    %4 = tpu.iota {dimensions = array<i32: 0>} : vector<8x1xi32>
    %c8_i32_1 = arith.constant 8 : i32
    %5 = vector.broadcast %c8_i32_1 : i32 to vector<8x1xi32>
    %6 = arith.cmpi slt, %4, %5 : vector<8x1xi32>
    %7 = arith.extui %6 : vector<8x1xi1> to vector<8x1xi32>
    %8 = arith.sitofp %7 : vector<8x1xi32> to vector<8x1xf32>
    %cst = arith.constant 0.000000e+00 : f32
    %9 = vector.broadcast %cst : f32 to vector<8x128xf32>
    %10 = arith.select %3, %0, %9 : vector<8x128xi1>, vector<8x128xf32>
    %11 = arith.mulf %10, %10 : vector<8x128xf32>
    %cst_2 = arith.constant dense<0.000000e+00> : vector<8xf32>
    %12 = vector.multi_reduction <add>, %11, %cst_2 [1] : vector<8x128xf32> to vector<8xf32>
    %13 = vector.shape_cast %12 : vector<8xf32> to vector<8x1xf32>
    %14 = math.sqrt %13 : vector<8x1xf32>
    %15 = arith.mulf %14, %8 : vector<8x1xf32>
    %cst_3 = arith.constant dense<0.000000e+00> : vector<1xf32>
    %16 = vector.multi_reduction <add>, %15, %cst_3 [0] : vector<8x1xf32> to vector<1xf32>
    %17 = vector.shape_cast %16 : vector<1xf32> to vector<1x1xf32>
    %cst_4 = arith.constant 8.000000e+00 : f32
    %18 = vector.broadcast %cst_4 : f32 to vector<1x1xf32>
    %19 = arith.divf %17, %18 : vector<1x1xf32>
    %cst_5 = arith.constant 9.99999997E-7 : f32
    %20 = vector.broadcast %cst_5 : f32 to vector<1x1xf32>
    %21 = arith.addf %19, %20 : vector<1x1xf32>
    %22 = vector.broadcast %21 : vector<1x1xf32> to vector<8x1xf32>
    %23 = arith.divf %14, %22 : vector<8x1xf32>
    %c0_6 = arith.constant 0 : index
    %c0_7 = arith.constant 0 : index
    %24 = vector.load %arg2[%c0_6, %c0_7] : memref<1x128xf32, #tpu.memory_space<vmem>>, vector<1x128xf32>
    %25 = vector.broadcast %23 : vector<8x1xf32> to vector<8x128xf32>
    %26 = arith.mulf %10, %25 : vector<8x128xf32>
    %27 = vector.broadcast %24 : vector<1x128xf32> to vector<8x128xf32>
    %28 = arith.mulf %27, %26 : vector<8x128xf32>
    %c0_8 = arith.constant 0 : index
    %c0_9 = arith.constant 0 : index
    %29 = vector.load %arg3[%c0_8, %c0_9] : memref<1x128xf32, #tpu.memory_space<vmem>>, vector<1x128xf32>
    %30 = vector.broadcast %29 : vector<1x128xf32> to vector<8x128xf32>
    %31 = arith.addf %28, %30 : vector<8x128xf32>
    %cst_10 = arith.constant 0xFF800000 : f32
    %32 = vector.broadcast %cst_10 : f32 to vector<8x128xf32>
    %33 = arith.select %3, %31, %32 : vector<8x128xi1>, vector<8x128xf32>
    %cst_11 = arith.constant dense<0xFF800000> : vector<8xf32>
    %34 = vector.multi_reduction <maximumf>, %33, %cst_11 [1] : vector<8x128xf32> to vector<8xf32>
    %35 = vector.shape_cast %34 : vector<8xf32> to vector<8x1xf32>
    %36 = vector.broadcast %35 : vector<8x1xf32> to vector<8x128xf32>
    %37 = arith.subf %33, %36 : vector<8x128xf32>
    %38 = math.exp %37 : vector<8x128xf32>
    %cst_12 = arith.constant dense<0.000000e+00> : vector<8xf32>
    %39 = vector.multi_reduction <add>, %38, %cst_12 [1] : vector<8x128xf32> to vector<8xf32>
    %40 = vector.shape_cast %39 : vector<8xf32> to vector<8x1xf32>
    %41 = vector.broadcast %40 : vector<8x1xf32> to vector<8x128xf32>
    %42 = arith.divf %38, %41 : vector<8x128xf32>
    %cst_13 = arith.constant 0.000000e+00 : f32
    %43 = vector.broadcast %cst_13 : f32 to vector<8x128xf32>
    %cst_14 = arith.constant dense<0xFF800000> : vector<8xf32>
    %44 = vector.multi_reduction <maximumf>, %42, %cst_14 [1] : vector<8x128xf32> to vector<8xf32>
    %45 = vector.shape_cast %44 : vector<8xf32> to vector<8x1xf32>
    %46 = vector.broadcast %45 : vector<8x1xf32> to vector<8x128xf32>
    %47 = arith.cmpf oeq, %42, %46 : vector<8x128xf32>
    %c128_i32 = arith.constant 128 : i32
    %48 = vector.broadcast %c128_i32 : i32 to vector<8x128xi32>
    %49 = arith.select %47, %1, %48 : vector<8x128xi1>, vector<8x128xi32>
    %cst_15 = arith.constant dense<2147483647> : vector<8xi32>
    %50 = vector.multi_reduction <minsi>, %49, %cst_15 [1] : vector<8x128xi32> to vector<8xi32>
    %51 = vector.shape_cast %50 : vector<8xi32> to vector<8x1xi32>
    %52 = vector.broadcast %51 : vector<8x1xi32> to vector<8x128xi32>
    %53 = arith.cmpi eq, %1, %52 : vector<8x128xi32>
    %54 = arith.select %53, %42, %43 : vector<8x128xi1>, vector<8x128xf32>
    %cst_16 = arith.constant 0xFF800000 : f32
    %55 = vector.broadcast %cst_16 : f32 to vector<8x128xf32>
    %56 = arith.select %53, %55, %42 : vector<8x128xi1>, vector<8x128xf32>
    %cst_17 = arith.constant dense<0xFF800000> : vector<8xf32>
    %57 = vector.multi_reduction <maximumf>, %56, %cst_17 [1] : vector<8x128xf32> to vector<8xf32>
    %58 = vector.shape_cast %57 : vector<8xf32> to vector<8x1xf32>
    %59 = vector.broadcast %58 : vector<8x1xf32> to vector<8x128xf32>
    %60 = arith.cmpf oeq, %56, %59 : vector<8x128xf32>
    %c128_i32_18 = arith.constant 128 : i32
    %61 = vector.broadcast %c128_i32_18 : i32 to vector<8x128xi32>
    %62 = arith.select %60, %1, %61 : vector<8x128xi1>, vector<8x128xi32>
    %cst_19 = arith.constant dense<2147483647> : vector<8xi32>
    %63 = vector.multi_reduction <minsi>, %62, %cst_19 [1] : vector<8x128xi32> to vector<8xi32>
    %64 = vector.shape_cast %63 : vector<8xi32> to vector<8x1xi32>
    %65 = vector.broadcast %64 : vector<8x1xi32> to vector<8x128xi32>
    %66 = arith.cmpi eq, %1, %65 : vector<8x128xi32>
    %67 = arith.select %66, %42, %54 : vector<8x128xi1>, vector<8x128xf32>
    %c0_20 = arith.constant 0 : index
    %c0_21 = arith.constant 0 : index
    %68 = vector.load %arg4[%c0_20, %c0_21] : memref<8x128xf32, #tpu.memory_space<vmem>>, vector<8x128xf32>
    tpu.vector_store %arg4[%c0_20, %c0_21], %67 {strides = array<i32>} : memref<8x128xf32, #tpu.memory_space<vmem>>, vector<8x128xf32>,
    return
  }
  func.func @transform_0(%arg0: i32) -> (i32, i32) {
    %c0_i32 = arith.constant 0 : i32
    %c0_i32_0 = arith.constant 0 : i32
    %c0_i32_1 = arith.constant 0 : i32
    return %c0_i32, %c0_i32_0 : i32, i32
  }
  func.func @transform_1(%arg0: i32) -> (i32, i32) {
    %c0_i32 = arith.constant 0 : i32
    %c0_i32_0 = arith.constant 0 : i32
    %c0_i32_1 = arith.constant 0 : i32
    return %c0_i32, %c0_i32_0 : i32, i32
  }
  func.func @transform_2(%arg0: i32) -> (i32, i32) {
    %c0_i32 = arith.constant 0 : i32
    %c0_i32_0 = arith.constant 0 : i32
    %c0_i32_1 = arith.constant 0 : i32
    return %c0_i32, %c0_i32_0 : i32, i32
  }
  func.func @transform_3(%arg0: i32) -> (i32, i32) {
    %c0_i32 = arith.constant 0 : i32
    %c0_i32_0 = arith.constant 0 : i32
    %c0_i32_1 = arith.constant 0 : i32
    return %c0_i32, %c0_i32_0 : i32, i32
  }
}

module attributes {stable_mosaic.version = 11 : i64} {
  func.func @_gate_kernel(%arg0: i32, %arg1: i32, %arg2: memref<8x128xf32, #tpu.memory_space<vmem>>, %arg3: memref<128x128xf32, #tpu.memory_space<vmem>>, %arg4: memref<1x128xf32, #tpu.memory_space<vmem>>, %arg5: memref<8x128xf32, #tpu.memory_space<vmem>>, %arg6: memref<8x128xf32, #tpu.memory_space<vmem>>) attributes {dimension_semantics = [#tpu.dimension_semantics<parallel>, #tpu.dimension_semantics<arbitrary>], iteration_bounds = array<i64: 1, 1>, scalar_prefetch = 0 : i64, scratch_operands = 0 : i64, tpu.core_type = #tpu.core_type<tc>, window_params = [{transform_indices = @transform_0, window_bounds = array<i64: 8, 128>}, {transform_indices = @transform_1, window_bounds = array<i64: 128, 128>}, {pipeline_mode = #tpu.pipeline_mode<synchronous>, transform_indices = @transform_2, window_bounds = array<i64: 1, 128>}, {transform_indices = @transform_3, window_bounds = array<i64: 8, 128>}, {transform_indices = @transform_4, window_bounds = array<i64: 8, 128>}]} {
    %c0_i32 = arith.constant 0 : i32
    %0 = arith.cmpi eq, %arg1, %c0_i32 : i32
    %1 = arith.extui %0 : i1 to i32
    %c0_i32_0 = arith.constant 0 : i32
    %2 = arith.cmpi ne, %1, %c0_i32_0 : i32
    scf.if %2 {
      %cst_10 = arith.constant 0.000000e+00 : f32
      %12 = vector.broadcast %cst_10 : f32 to vector<8x128xf32>
      %c0_11 = arith.constant 0 : index
      %c0_12 = arith.constant 0 : index
      %13 = vector.load %arg6[%c0_11, %c0_12] : memref<8x128xf32, #tpu.memory_space<vmem>>, vector<8x128xf32>
      tpu.vector_store %arg6[%c0_11, %c0_12], %12 {strides = array<i32>} : memref<8x128xf32, #tpu.memory_space<vmem>>, vector<8x128xf32>,
    } else {
    }
    %c0 = arith.constant 0 : index
    %c0_1 = arith.constant 0 : index
    %3 = vector.load %arg6[%c0, %c0_1] : memref<8x128xf32, #tpu.memory_space<vmem>>, vector<8x128xf32>
    %c0_2 = arith.constant 0 : index
    %c0_3 = arith.constant 0 : index
    %4 = vector.load %arg2[%c0_2, %c0_3] : memref<8x128xf32, #tpu.memory_space<vmem>>, vector<8x128xf32>
    %c0_4 = arith.constant 0 : index
    %c0_5 = arith.constant 0 : index
    %5 = vector.load %arg3[%c0_4, %c0_5] : memref<128x128xf32, #tpu.memory_space<vmem>>, vector<128x128xf32>
    %cst = arith.constant dense<0.000000e+00> : vector<8x128xf32>
    %6 = tpu.matmul %4, %5, %cst {dimension_numbers = #tpu.dot_dimension_numbers<[1], [0], [0], [1], [0, 0, 1, 1], [], []>} : vector<8x128xf32>, vector<128x128xf32>, vector<8x128xf32> -> vector<8x128xf32>
    %7 = arith.addf %3, %6 : vector<8x128xf32>
    %c0_6 = arith.constant 0 : index
    %c0_7 = arith.constant 0 : index
    %8 = vector.load %arg6[%c0_6, %c0_7] : memref<8x128xf32, #tpu.memory_space<vmem>>, vector<8x128xf32>
    tpu.vector_store %arg6[%c0_6, %c0_7], %7 {strides = array<i32>} : memref<8x128xf32, #tpu.memory_space<vmem>>, vector<8x128xf32>,
    %c0_i32_8 = arith.constant 0 : i32
    %9 = arith.cmpi eq, %arg1, %c0_i32_8 : i32
    %10 = arith.extui %9 : i1 to i32
    %c0_i32_9 = arith.constant 0 : i32
    %11 = arith.cmpi ne, %10, %c0_i32_9 : i32
    scf.if %11 {
      %c0_10 = arith.constant 0 : index
      %c0_11 = arith.constant 0 : index
      %12 = vector.load %arg6[%c0_10, %c0_11] : memref<8x128xf32, #tpu.memory_space<vmem>>, vector<8x128xf32>
      %c0_12 = arith.constant 0 : index
      %c0_13 = arith.constant 0 : index
      %13 = vector.load %arg4[%c0_12, %c0_13] : memref<1x128xf32, #tpu.memory_space<vmem>>, vector<1x128xf32>
      %c0_14 = arith.constant 0 : index
      %c0_15 = arith.constant 0 : index
      %14 = vector.load %arg5[%c0_14, %c0_15] : memref<8x128xf32, #tpu.memory_space<vmem>>, vector<8x128xf32>
      %15 = vector.broadcast %13 : vector<1x128xf32> to vector<8x128xf32>
      %16 = arith.addf %15, %14 : vector<8x128xf32>
      %17 = arith.addf %12, %16 : vector<8x128xf32>
      %c0_16 = arith.constant 0 : index
      %c0_17 = arith.constant 0 : index
      %18 = vector.load %arg6[%c0_16, %c0_17] : memref<8x128xf32, #tpu.memory_space<vmem>>, vector<8x128xf32>
      tpu.vector_store %arg6[%c0_16, %c0_17], %17 {strides = array<i32>} : memref<8x128xf32, #tpu.memory_space<vmem>>, vector<8x128xf32>,
    } else {
    }
    return
  }
  func.func @transform_0(%arg0: i32, %arg1: i32) -> (i32, i32) {
    %c0_i32 = arith.constant 0 : i32
    return %arg0, %arg1 : i32, i32
  }
  func.func @transform_1(%arg0: i32, %arg1: i32) -> (i32, i32) {
    %c0_i32 = arith.constant 0 : i32
    %c0_i32_0 = arith.constant 0 : i32
    return %arg1, %c0_i32 : i32, i32
  }
  func.func @transform_2(%arg0: i32, %arg1: i32) -> (i32, i32) {
    %c0_i32 = arith.constant 0 : i32
    %c0_i32_0 = arith.constant 0 : i32
    %c0_i32_1 = arith.constant 0 : i32
    return %c0_i32, %c0_i32_0 : i32, i32
  }
  func.func @transform_3(%arg0: i32, %arg1: i32) -> (i32, i32) {
    %c0_i32 = arith.constant 0 : i32
    %c0_i32_0 = arith.constant 0 : i32
    return %arg0, %c0_i32 : i32, i32
  }
  func.func @transform_4(%arg0: i32, %arg1: i32) -> (i32, i32) {
    %c0_i32 = arith.constant 0 : i32
    %c0_i32_0 = arith.constant 0 : i32
    return %arg0, %c0_i32 : i32, i32
  }
}

module attributes {stable_mosaic.version = 11 : i64} {
  func.func @_expert_kernel(%arg0: i32, %arg1: i32, %arg2: memref<8x128xf32, #tpu.memory_space<vmem>>, %arg3: memref<8x128xbf16, #tpu.memory_space<vmem>>, %arg4: memref<128x1024xbf16, #tpu.memory_space<vmem>>, %arg5: memref<1x1024xf32, #tpu.memory_space<vmem>>, %arg6: memref<8x128xf32, #tpu.memory_space<vmem>>, %arg7: memref<8x1024xf32, #tpu.memory_space<vmem>>) attributes {dimension_semantics = [#tpu.dimension_semantics<parallel>, #tpu.dimension_semantics<arbitrary>], iteration_bounds = array<i64: 1, 1>, scalar_prefetch = 0 : i64, scratch_operands = 1 : i64, tpu.core_type = #tpu.core_type<tc>, window_params = [{transform_indices = @transform_0, window_bounds = array<i64: 8, 128>}, {transform_indices = @transform_1, window_bounds = array<i64: 8, 128>}, {transform_indices = @transform_2, window_bounds = array<i64: 128, 1024>}, {pipeline_mode = #tpu.pipeline_mode<synchronous>, transform_indices = @transform_3, window_bounds = array<i64: 1, 1024>}, {transform_indices = @transform_4, window_bounds = array<i64: 8, 128>}]} {
    %c0_i32 = arith.constant 0 : i32
    %0 = arith.cmpi eq, %arg1, %c0_i32 : i32
    %1 = arith.extui %0 : i1 to i32
    %c0_i32_0 = arith.constant 0 : i32
    %2 = arith.cmpi ne, %1, %c0_i32_0 : i32
    scf.if %2 {
      %cst_10 = arith.constant 0.000000e+00 : f32
      %12 = vector.broadcast %cst_10 : f32 to vector<8x1024xf32>
      %c0_11 = arith.constant 0 : index
      %c0_12 = arith.constant 0 : index
      %13 = vector.load %arg7[%c0_11, %c0_12] : memref<8x1024xf32, #tpu.memory_space<vmem>>, vector<8x1024xf32>
      tpu.vector_store %arg7[%c0_11, %c0_12], %12 {strides = array<i32>} : memref<8x1024xf32, #tpu.memory_space<vmem>>, vector<8x1024xf32>,
    } else {
    }
    %c0 = arith.constant 0 : index
    %c0_1 = arith.constant 0 : index
    %3 = vector.load %arg7[%c0, %c0_1] : memref<8x1024xf32, #tpu.memory_space<vmem>>, vector<8x1024xf32>
    %c0_2 = arith.constant 0 : index
    %c0_3 = arith.constant 0 : index
    %4 = vector.load %arg3[%c0_2, %c0_3] : memref<8x128xbf16, #tpu.memory_space<vmem>>, vector<8x128xbf16>
    %c0_4 = arith.constant 0 : index
    %c0_5 = arith.constant 0 : index
    %5 = vector.load %arg4[%c0_4, %c0_5] : memref<128x1024xbf16, #tpu.memory_space<vmem>>, vector<128x1024xbf16>
    %cst = arith.constant dense<0.000000e+00> : vector<8x1024xf32>
    %6 = tpu.matmul %4, %5, %cst {dimension_numbers = #tpu.dot_dimension_numbers<[1], [0], [0], [1], [0, 0, 1, 1], [], []>} : vector<8x128xbf16>, vector<128x1024xbf16>, vector<8x1024xf32> -> vector<8x1024xf32>
    %7 = arith.addf %3, %6 : vector<8x1024xf32>
    %c0_6 = arith.constant 0 : index
    %c0_7 = arith.constant 0 : index
    %8 = vector.load %arg7[%c0_6, %c0_7] : memref<8x1024xf32, #tpu.memory_space<vmem>>, vector<8x1024xf32>
    tpu.vector_store %arg7[%c0_6, %c0_7], %7 {strides = array<i32>} : memref<8x1024xf32, #tpu.memory_space<vmem>>, vector<8x1024xf32>,
    %c0_i32_8 = arith.constant 0 : i32
    %9 = arith.cmpi eq, %arg1, %c0_i32_8 : i32
    %10 = arith.extui %9 : i1 to i32
    %c0_i32_9 = arith.constant 0 : i32
    %11 = arith.cmpi ne, %10, %c0_i32_9 : i32
    scf.if %11 {
      %c0_10 = arith.constant 0 : index
      %c0_11 = arith.constant 0 : index
      %12 = vector.load %arg7[%c0_10, %c0_11] : memref<8x1024xf32, #tpu.memory_space<vmem>>, vector<8x1024xf32>
      %c0_12 = arith.constant 0 : index
      %c0_13 = arith.constant 0 : index
      %13 = vector.load %arg5[%c0_12, %c0_13] : memref<1x1024xf32, #tpu.memory_space<vmem>>, vector<1x1024xf32>
      %14 = vector.broadcast %13 : vector<1x1024xf32> to vector<8x1024xf32>
      %15 = arith.addf %12, %14 : vector<8x1024xf32>
      %c0_14 = arith.constant 0 : index
      %c0_15 = arith.constant 0 : index
      %16 = vector.load %arg2[%c0_14, %c0_15] : memref<8x128xf32, #tpu.memory_space<vmem>>, vector<8x128xf32>
      %17 = vector.extract_strided_slice %16 {offsets = [0, 0], sizes = [8, 1], strides = [1, 1]} : vector<8x128xf32> to vector<8x1xf32>
      %18 = vector.extract_strided_slice %15 {offsets = [0, 0], sizes = [8, 128], strides = [1, 1]} : vector<8x1024xf32> to vector<8x128xf32>
      %19 = vector.broadcast %17 : vector<8x1xf32> to vector<8x128xf32>
      %20 = arith.mulf %19, %18 : vector<8x128xf32>
      %21 = vector.extract_strided_slice %16 {offsets = [0, 1], sizes = [8, 1], strides = [1, 1]} : vector<8x128xf32> to vector<8x1xf32>
      %22 = vector.extract_strided_slice %15 {offsets = [0, 128], sizes = [8, 128], strides = [1, 1]} : vector<8x1024xf32> to vector<8x128xf32>
      %23 = vector.broadcast %21 : vector<8x1xf32> to vector<8x128xf32>
      %24 = arith.mulf %23, %22 : vector<8x128xf32>
      %25 = arith.addf %20, %24 : vector<8x128xf32>
      %26 = vector.extract_strided_slice %16 {offsets = [0, 2], sizes = [8, 1], strides = [1, 1]} : vector<8x128xf32> to vector<8x1xf32>
      %27 = vector.extract_strided_slice %15 {offsets = [0, 256], sizes = [8, 128], strides = [1, 1]} : vector<8x1024xf32> to vector<8x128xf32>
      %28 = vector.broadcast %26 : vector<8x1xf32> to vector<8x128xf32>
      %29 = arith.mulf %28, %27 : vector<8x128xf32>
      %30 = arith.addf %25, %29 : vector<8x128xf32>
      %31 = vector.extract_strided_slice %16 {offsets = [0, 3], sizes = [8, 1], strides = [1, 1]} : vector<8x128xf32> to vector<8x1xf32>
      %32 = vector.extract_strided_slice %15 {offsets = [0, 384], sizes = [8, 128], strides = [1, 1]} : vector<8x1024xf32> to vector<8x128xf32>
      %33 = vector.broadcast %31 : vector<8x1xf32> to vector<8x128xf32>
      %34 = arith.mulf %33, %32 : vector<8x128xf32>
      %35 = arith.addf %30, %34 : vector<8x128xf32>
      %36 = vector.extract_strided_slice %16 {offsets = [0, 4], sizes = [8, 1], strides = [1, 1]} : vector<8x128xf32> to vector<8x1xf32>
      %37 = vector.extract_strided_slice %15 {offsets = [0, 512], sizes = [8, 128], strides = [1, 1]} : vector<8x1024xf32> to vector<8x128xf32>
      %38 = vector.broadcast %36 : vector<8x1xf32> to vector<8x128xf32>
      %39 = arith.mulf %38, %37 : vector<8x128xf32>
      %40 = arith.addf %35, %39 : vector<8x128xf32>
      %41 = vector.extract_strided_slice %16 {offsets = [0, 5], sizes = [8, 1], strides = [1, 1]} : vector<8x128xf32> to vector<8x1xf32>
      %42 = vector.extract_strided_slice %15 {offsets = [0, 640], sizes = [8, 128], strides = [1, 1]} : vector<8x1024xf32> to vector<8x128xf32>
      %43 = vector.broadcast %41 : vector<8x1xf32> to vector<8x128xf32>
      %44 = arith.mulf %43, %42 : vector<8x128xf32>
      %45 = arith.addf %40, %44 : vector<8x128xf32>
      %46 = vector.extract_strided_slice %16 {offsets = [0, 6], sizes = [8, 1], strides = [1, 1]} : vector<8x128xf32> to vector<8x1xf32>
      %47 = vector.extract_strided_slice %15 {offsets = [0, 768], sizes = [8, 128], strides = [1, 1]} : vector<8x1024xf32> to vector<8x128xf32>
      %48 = vector.broadcast %46 : vector<8x1xf32> to vector<8x128xf32>
      %49 = arith.mulf %48, %47 : vector<8x128xf32>
      %50 = arith.addf %45, %49 : vector<8x128xf32>
      %51 = vector.extract_strided_slice %16 {offsets = [0, 7], sizes = [8, 1], strides = [1, 1]} : vector<8x128xf32> to vector<8x1xf32>
      %52 = vector.extract_strided_slice %15 {offsets = [0, 896], sizes = [8, 128], strides = [1, 1]} : vector<8x1024xf32> to vector<8x128xf32>
      %53 = vector.broadcast %51 : vector<8x1xf32> to vector<8x128xf32>
      %54 = arith.mulf %53, %52 : vector<8x128xf32>
      %55 = arith.addf %50, %54 : vector<8x128xf32>
      %c0_16 = arith.constant 0 : index
      %c0_17 = arith.constant 0 : index
      %56 = vector.load %arg6[%c0_16, %c0_17] : memref<8x128xf32, #tpu.memory_space<vmem>>, vector<8x128xf32>
      tpu.vector_store %arg6[%c0_16, %c0_17], %55 {strides = array<i32>} : memref<8x128xf32, #tpu.memory_space<vmem>>, vector<8x128xf32>,
    } else {
    }
    return
  }
  func.func @transform_0(%arg0: i32, %arg1: i32) -> (i32, i32) {
    %c0_i32 = arith.constant 0 : i32
    %c0_i32_0 = arith.constant 0 : i32
    return %arg0, %c0_i32 : i32, i32
  }
  func.func @transform_1(%arg0: i32, %arg1: i32) -> (i32, i32) {
    %c0_i32 = arith.constant 0 : i32
    return %arg0, %arg1 : i32, i32
  }
  func.func @transform_2(%arg0: i32, %arg1: i32) -> (i32, i32) {
    %c0_i32 = arith.constant 0 : i32
    %c0_i32_0 = arith.constant 0 : i32
    return %arg1, %c0_i32 : i32, i32
  }
  func.func @transform_3(%arg0: i32, %arg1: i32) -> (i32, i32) {
    %c0_i32 = arith.constant 0 : i32
    %c0_i32_0 = arith.constant 0 : i32
    %c0_i32_1 = arith.constant 0 : i32
    return %c0_i32, %c0_i32_0 : i32, i32
  }
  func.func @transform_4(%arg0: i32, %arg1: i32) -> (i32, i32) {
    %c0_i32 = arith.constant 0 : i32
    %c0_i32_0 = arith.constant 0 : i32
    return %arg0, %c0_i32 : i32, i32
  }
}

</mosaic_0001>

<bundles_post_ra>
// kernel: moe_forward.4
= control target key start
LH: loop header
LB: loop body
LE: loop exit
PB: predicated region body
PF: predicated region fallthrough
CT: control target
= control target key end

     0   :  { %v15_v0 = vlaneseq  ;;  %s176_s0 = inlined_call_operand.vmem [shape: f32[8,128], index: 0, kind: input, shape index: {}]   ;;  %s177_s1 = inlined_call_operand.vmem [shape: f32[1,128], index: 1, kind: input, shape index: {}]   ;;  %s178_s2 = inlined_call_operand.vmem [shape: f32[1,128], index: 2, kind: input, shape index: {}]   ;;  %s179_s3 = inlined_call_operand.vmem [shape: f32[8,128], index: 3, kind: output, shape index: {}]  }
   0x1   :  { %v14_v1 = vld [vmem:[%s176_s0] sm:$0xff] }
   0x2   :  { %v152_v2 = vand.u32 127, %v15_v0  ;;  %v119_v21 = vld [vmem:[%s177_s1] ss:$0 sm:$0xff] }
   0x3   :  { %v120_v23 = vld [vmem:[%s178_s2] ss:$0 sm:$0xff] }
   0x4   :  { %vm17_vm0 = vcmp.lt.s32.totalorder %v152_v2, 8 }
   0x5   :  { %v23_v3 = vsel %vm17_vm0, %v14_v1, 0.0 }
   0x6   :  { %v24_v4 = vmul.f32 %v23_v3, %v23_v3 }
   0x8   :  { %25 = vadd.xlane.f32.xlu0 %v24_v4 }
  0x95   :  { %v26_v5 = vpop.xlane.xlu0 %25 }
  0x96   :  { %121 = vrsqrt.f32 %v26_v5  ;;  %vm29_vm1 = vcmp.eq.f32.partialorder %v26_v5, inf  ;;  %v32_v8 = vand.u32 2147483648, %v26_v5  ;;  %vm31_vm2 = vcmp.eq.f32.partialorder %v26_v5, 0.0 }
  0xa0   :  { %v122_v6 = vpop.eup %121 }
  0xa1   :  { %v28_v7 = vmul.f32 %v122_v6, %v26_v5 }
  0xa3   :  { %v30_v9 = vsel %vm29_vm1, %v26_v5, %v28_v7 }
  0xa4   :  { %v33_v10 = vsel %vm31_vm2, %v32_v8, %v30_v9 }
  0xa5   :  { %v35_v11 = vrot.slane %v33_v10, 4 }
  0xa7   :  { %v36_v12 = vadd.f32 %v35_v11, %v33_v10 }
  0xa9   :  { %v37_v13 = vrot.slane %v36_v12, 2 }
  0xab   :  { %v38_v14 = vadd.f32 %v37_v13, %v36_v12 }
  0xad   :  { %v39_v15 = vrot.slane %v38_v14, 1 }
  0xaf   :  { %v40_v16 = vadd.f32 %v39_v15, %v38_v14 }
  0xb1   :  { %v42_v17 = vmul.f32 0.125, %v40_v16 }
  0xb3   :  { %v43_v18 = vadd.f32 1e-06, %v42_v17 }
  0xb5   :  { %123 = vrcp.f32 %v43_v18 }
  0xbf   :  { %v124_v19 = vpop.eup %123 }
  0xc0   :  { %v45_v20 = vmul.f32 %v124_v19, %v33_v10 }
  0xc2   :  { %v47_v22 = vmul.f32 %v45_v20, %v23_v3 }
  0xc4   :  { %v54_v24 = vmul.f32 %v119_v21, %v47_v22 }
  0xc6   :  { %v62_v25 = vadd.f32 %v120_v23, %v54_v24 }
  0xc8   :  { %v63_v26 = vsel %vm17_vm0, %v62_v25, -inf }
  0xc9   :  { %64 = vmax.xlane.f32.xlu0 %v63_v26 }
 0x156   :  { %v65_v27 = vpop.xlane.xlu0 %64 }
 0x157   :  { %v66_v28 = vsub.f32 %v63_v26, %v65_v27 }
 0x159   :  { %v67_v29 = vmul.f32 1.442695, %v66_v28 }
 0x15b   :  { %125 = vpow2.f32 %v67_v29 }
 0x165   :  { %v126_v30 = vpop.eup %125 }
 0x166   :  { %69 = vadd.xlane.f32.xlu1 %v126_v30 }
 0x1f3   :  { %v70_v31 = vpop.xlane.xlu1 %69 }
 0x1f4   :  { %127 = vrcp.f32 %v70_v31 }
 0x1fe   :  { %v128_v32 = vpop.eup %127 }
 0x1ff   :  { %v72_v33 = vmul.f32 %v128_v32, %v126_v30 }
 0x201   :  { %73 = vmax.xlane.f32.xlu1 %v72_v33 }
 0x28e   :  { %v74_v34 = vpop.xlane.xlu1 %73 }
 0x28f   :  { %vm75_vm3 = vcmp.eq.f32.partialorder %v72_v33, %v74_v34 }
 0x290   :  { %v76_v35 = vsel %vm75_vm3, %v152_v2, 128 }
 0x291   :  { %v78_v36 = vshra.s32 %v76_v35, 16  ;;  %v77_v38 = vand.u32 65535, %v76_v35 }
 0x293   :  { %v80_v37 = vcvt.s32.f32 %v78_v36  ;;  %v79_v40 = vcvt.s32.f32 %v77_v38 }
 0x295   :  { %81 = vmin.xlane.f32.xlu0 %v80_v37 }
 0x322   :  { %v82_v39 = vpop.xlane.xlu0 %81 }
 0x323   :  { %vm83_vm4 = vcmp.eq.f32.partialorder %v80_v37, %v82_v39  ;;  %v88_v42 = vcvt.f32.s32 %v82_v39 }
 0x324   :  { %v84_v41 = vsel %vm83_vm4, %v79_v40, inf }
 0x325   :  { %85 = vmin.xlane.f32.xlu1 %v84_v41  ;;  %v89_v44 = vshll.u32 %v88_v42, 16 }
 0x3b2   :  { %v86_v43 = vpop.xlane.xlu1 %85 }
 0x3b3   :  { %v87_v45 = vcvt.f32.s32 %v86_v43 }
 0x3b5   :  { %v90_v46 = vadd.s32 %v89_v44, %v87_v45 }
 0x3b7   :  { %vm91_vm5 = vcmp.eq.s32.totalorder %v152_v2, %v90_v46 }
 0x3b8   :  { %v93_v47 = vsel %vm91_vm5, -inf, %v72_v33  ;;  %v92_v61 = vsel %vm91_vm5, %v72_v33, 0.0 }
 0x3b9   :  { %94 = vmax.xlane.f32.xlu0 %v93_v47 }
 0x446   :  { %v95_v48 = vpop.xlane.xlu0 %94 }
 0x447   :  { %vm96_vm6 = vcmp.eq.f32.partialorder %v93_v47, %v95_v48 }
 0x448   :  { %v97_v49 = vsel %vm96_vm6, %v152_v2, 128 }
 0x449   :  { %v99_v50 = vshra.s32 %v97_v49, 16  ;;  %v98_v52 = vand.u32 65535, %v97_v49 }
 0x44b   :  { %v101_v51 = vcvt.s32.f32 %v99_v50  ;;  %v100_v54 = vcvt.s32.f32 %v98_v52 }
 0x44d   :  { %102 = vmin.xlane.f32.xlu1 %v101_v51 }
 0x4da   :  { %v103_v53 = vpop.xlane.xlu1 %102 }
 0x4db   :  { %vm104_vm7 = vcmp.eq.f32.partialorder %v101_v51, %v103_v53  ;;  %v109_v56 = vcvt.f32.s32 %v103_v53 }
 0x4dc   :  { %v105_v55 = vsel %vm104_vm7, %v100_v54, inf }
 0x4dd   :  { %106 = vmin.xlane.f32.xlu0 %v105_v55  ;;  %v110_v58 = vshll.u32 %v109_v56, 16 }
 0x56a   :  { %v107_v57 = vpop.xlane.xlu0 %106 }
 0x56b   :  { %v108_v59 = vcvt.f32.s32 %v107_v57 }
 0x56d   :  { %v111_v60 = vadd.s32 %v110_v58, %v108_v59 }
 0x56f   :  { %vm112_vm8 = vcmp.eq.s32.totalorder %v152_v2, %v111_v60 }
 0x570   :  { %v113_v62 = vsel %vm112_vm8, %v72_v33, %v92_v61 }
 0x571   :  { %114 = vst [vmem:[%s179_s3] sm:$0xff] %v113_v62 }

// kernel: moe_forward.3
= control target key start
LH: loop header
LB: loop body
LE: loop exit
PB: predicated region body
PF: predicated region fallthrough
CT: control target
= control target key end

     0   :  { %v211_v0 = vmov 0.0|0.0   ;;  %vm212_vm0 = vmmov 0   ;;  %v213_v4 = vmov 0.0   ;;  %s299_s1 = inlined_call_operand.vmem [shape: f32[128,128], index: 1, kind: input, shape index: {}]   ;;  %s300_s0 = inlined_call_operand.vmem [shape: f32[8,128], index: 0, kind: input, shape index: {}]   ;;  %s301_s2 = inlined_call_operand.vmem [shape: f32[1,128], index: 2, kind: input, shape index: {}]   ;;  %s302_s3 = inlined_call_operand.vmem [shape: f32[8,128], index: 3, kind: input, shape index: {}]   ;;  %s303_s4 = inlined_call_operand.vmem [shape: f32[8,128], index: 4, kind: output, shape index: {}]  }
   0x1   :  { %184 = vmatprep.subr.bf16.mxu0 %v211_v0  ;;  %v24_v1 = vld [vmem:[%s299_s1] sm:$0xff]  ;;  %v25_v2 = vld [vmem:[%s299_s1 + $0x8] sm:$0xff]  ;;  %v26_v3 = vld [vmem:[%s299_s1 + $0x10] sm:$0xff]  ;;  %181 = vmatprep.mubr.msk.f32.mxu0 %vm212_vm0, %v213_v4 }
   0x2   :  { %v185_v5 = vpack.c.bf16 %v25_v2, %v24_v1  ;;  %v27_v6 = vld [vmem:[%s299_s1 + $0x18] sm:$0xff]  ;;  %v28_v8 = vld [vmem:[%s299_s1 + $0x20] sm:$0xff]  ;;  %v29_v9 = vld [vmem:[%s299_s1 + $0x28] sm:$0xff] }
   0x3   :  { %v188_v7 = vpack.c.bf16 %v27_v6, %v26_v3  ;;  %v191_v10 = vpack.c.bf16 %v29_v9, %v28_v8  ;;  %v30_v11 = vld [vmem:[%s299_s1 + $0x30] sm:$0xff]  ;;  %v31_v12 = vld [vmem:[%s299_s1 + $0x38] sm:$0xff]  ;;  %v32_v14 = vld [vmem:[%s299_s1 + $0x40] sm:$0xff] }
   0x4   :  { %186 = vmatpush3.bf16.msra.mxu0 %v185_v5  ;;  %v194_v13 = vpack.c.bf16 %v31_v12, %v30_v11  ;;  %v33_v15 = vld [vmem:[%s299_s1 + $0x48] sm:$0xff]  ;;  %v34_v17 = vld [vmem:[%s299_s1 + $0x50] sm:$0xff]  ;;  %v35_v18 = vld [vmem:[%s299_s1 + $0x58] sm:$0xff] }
   0x5   :  { %187 = vmatprep.subr.bf16.mxu0 %v211_v0  ;;  %v197_v16 = vpack.c.bf16 %v33_v15, %v32_v14  ;;  %v200_v19 = vpack.c.bf16 %v35_v18, %v34_v17  ;;  %v36_v20 = vld [vmem:[%s299_s1 + $0x60] sm:$0xff]  ;;  %v37_v21 = vld [vmem:[%s299_s1 + $0x68] sm:$0xff]  ;;  %v38_v23 = vld [vmem:[%s299_s1 + $0x70] sm:$0xff] }
   0x6   :  { %v203_v22 = vpack.c.bf16 %v37_v21, %v36_v20  ;;  %v39_v24 = vld [vmem:[%s299_s1 + $0x78] sm:$0xff]  ;;  %v23_v26 = vld [vmem:[%s300_s0] sm:$0xff] }
   0x7   :  { %v206_v25 = vpack.c.bf16 %v39_v24, %v38_v23  ;;  %v131_v27 = vld [vmem:[%s301_s2] ss:$0 sm:$0xff] }
   0x8   :  { %189 = vmatpush3.bf16.msra.mxu0 %v188_v7  ;;  %v117_v28 = vld [vmem:[%s302_s3] sm:$0xff] }
   0x9   :  { %190 = vmatprep.subr.bf16.mxu0 %v211_v0  ;;  %v124_v29 = vadd.f32 %v131_v27, %v117_v28 }
   0xc   :  { %192 = vmatpush3.bf16.msra.mxu0 %v191_v10 }
   0xd   :  { %193 = vmatprep.subr.bf16.mxu0 %v211_v0 }
  0x10   :  { %195 = vmatpush3.bf16.msra.mxu0 %v194_v13 }
  0x11   :  { %196 = vmatprep.subr.bf16.mxu0 %v211_v0 }
  0x14   :  { %198 = vmatpush3.bf16.msra.mxu0 %v197_v16 }
  0x15   :  { %199 = vmatprep.subr.bf16.mxu0 %v211_v0 }
  0x18   :  { %201 = vmatpush3.bf16.msra.mxu0 %v200_v19 }
  0x19   :  { %202 = vmatprep.subr.bf16.mxu0 %v211_v0 }
  0x1c   :  { %204 = vmatpush3.bf16.msra.mxu0 %v203_v22 }
  0x1d   :  { %205 = vmatprep.subr.bf16.mxu0 %v211_v0 }
  0x20   :  { %207 = vmatpush3.bf16.msra.mxu0 %v206_v25 }
  0x23   :  { %182 = vmatmul.mubr.f32.vlgmr.msra.gmra.mrb[0].mxu0 %v23_v26 }
  0xf6   :  { %v106_v30 = vpop.f32.mrb[0].mxu0 }
  0xf7   :  { %v183_v31 = vpop.f32.mrb[1].mxu0  ;;  %v125_v32 = vadd.f32 %v124_v29, %v106_v30 }
  0xf9   :  { %126 = vst [vmem:[%s303_s4] sm:$0xff] %v125_v32 }

// kernel: moe_forward.5
= control target key start
LH: loop header
LB: loop body
LE: loop exit
PB: predicated region body
PF: predicated region fallthrough
CT: control target
= control target key end

     0   :  { %v835_v8 = vmov 0   ;;  %v836_v19 = vmov 2   ;;  %s1103_s0 = inlined_call_operand.vmem [shape: f32[8,128], index: 0, kind: input, shape index: {}]   ;;  %s1104_s1 = inlined_call_operand.vmem [shape: bf16[8,128], index: 1, kind: input, shape index: {}]   ;;  %s1105_s2 = inlined_call_operand.vmem [shape: bf16[128,1024], index: 2, kind: input, shape index: {}]   ;;  %s1106_s3 = inlined_call_operand.vmem [shape: f32[1,1024], index: 3, kind: input, shape index: {}]   ;;  %s1107_s4 = inlined_call_operand.hbm [shape: f32[8,128], index: 4, kind: output, shape index: {}]  }
   0x1   :  { %v40_v0 = vld [vmem:[%s1105_s2] sm:$0xff]  ;;  %v41_v2 = vld [vmem:[%s1105_s2 + $0x8] sm:$0xff]  ;;  %456 = vmatprep.mubr.bf16.mxu0 %v835_v8  ;;  %497 = vmatprep.mubr.bf16.mxu1 %v835_v8 }
   0x2   :  { %v44_v1 = vld [vmem:[%s1105_s2 + $0x20] sm:$0xff]  ;;  %v45_v5 = vld [vmem:[%s1105_s2 + $0x28] sm:$0xff]  ;;  %802 = vset.pattern.permute.xlu0 %v835_v8  ;;  %804 = vset.pattern.permute.xlu1 %v836_v19 }
   0x3   :  { %v730_v3 = vcombine.high %v40_v0, %v44_v1  ;;  %v729_v4 = vcombine.low %v40_v0, %v44_v1  ;;  %v48_v6 = vld [vmem:[%s1105_s2 + $0x40] sm:$0xff]  ;;  %v732_v9 = vcombine.high %v41_v2, %v45_v5  ;;  %v731_v10 = vcombine.low %v41_v2, %v45_v5  ;;  %v49_v12 = vld [vmem:[%s1105_s2 + $0x48] sm:$0xff] }
   0x4   :  { %v52_v7 = vld [vmem:[%s1105_s2 + $0x60] sm:$0xff]  ;;  %v53_v13 = vld [vmem:[%s1105_s2 + $0x68] sm:$0xff] }
   0x5   :  { %v738_v11 = vcombine.high %v48_v6, %v52_v7  ;;  %v56_v14 = vld [vmem:[%s1105_s2 + $0x80] sm:$0xff]  ;;  %424 = vmatprep.subr.bf16.mxu0 %v730_v3  ;;  %v740_v15 = vcombine.high %v49_v12, %v53_v13  ;;  %v57_v17 = vld [vmem:[%s1105_s2 + $0x88] sm:$0xff]  ;;  %465 = vmatprep.subr.bf16.mxu1 %v732_v9  ;;  %v737_v20 = vcombine.low %v48_v6, %v52_v7 }
   0x6   :  { %v60_v16 = vld [vmem:[%s1105_s2 + $0xa0] sm:$0xff]  ;;  %v61_v18 = vld [vmem:[%s1105_s2 + $0xa8] sm:$0xff]  ;;  %425 = vmatpush1.bf16.msra.mxu0 %v729_v4  ;;  %466 = vmatpush1.bf16.msra.mxu1 %v731_v10  ;;  %v739_v21 = vcombine.low %v49_v12, %v53_v13 }
   0x7   :  { %426 = vmatprep.subr.bf16.mxu0 %v738_v11  ;;  %v746_v22 = vcombine.high %v56_v14, %v60_v16  ;;  %467 = vmatprep.subr.bf16.mxu1 %v740_v15  ;;  %v748_v23 = vcombine.high %v57_v17, %v61_v18  ;;  %v64_v24 = vld [vmem:[%s1105_s2 + $0xc0] sm:$0xff]  ;;  %v65_v26 = vld [vmem:[%s1105_s2 + $0xc8] sm:$0xff]  ;;  %v745_v28 = vcombine.low %v56_v14, %v60_v16 }
   0x8   :  { %v68_v25 = vld [vmem:[%s1105_s2 + $0xe0] sm:$0xff]  ;;  %v69_v27 = vld [vmem:[%s1105_s2 + $0xe8] sm:$0xff]  ;;  %v747_v29 = vcombine.low %v57_v17, %v61_v18 }
   0x9   :  { %v754_v30 = vcombine.high %v64_v24, %v68_v25  ;;  %v756_v31 = vcombine.high %v65_v26, %v69_v27  ;;  %v72_v32 = vld [vmem:[%s1105_s2 + $0x100] sm:$0xff]  ;;  %v73_v34 = vld [vmem:[%s1105_s2 + $0x108] sm:$0xff]  ;;  %v753_v36 = vcombine.low %v64_v24, %v68_v25  ;;  %v755_v37 = vcombine.low %v65_v26, %v69_v27 }
   0xa   :  { %427 = vmatpush1.bf16.msra.mxu0 %v737_v20  ;;  %468 = vmatpush1.bf16.msra.mxu1 %v739_v21  ;;  %v76_v33 = vld [vmem:[%s1105_s2 + $0x120] sm:$0xff]  ;;  %v77_v35 = vld [vmem:[%s1105_s2 + $0x128] sm:$0xff] }
   0xb   :  { %428 = vmatprep.subr.bf16.mxu0 %v746_v22  ;;  %469 = vmatprep.subr.bf16.mxu1 %v748_v23  ;;  %v762_v38 = vcombine.high %v72_v32, %v76_v33  ;;  %v764_v39 = vcombine.high %v73_v34, %v77_v35  ;;  %v80_v40 = vld [vmem:[%s1105_s2 + $0x140] sm:$0xff]  ;;  %v81_v42 = vld [vmem:[%s1105_s2 + $0x148] sm:$0xff]  ;;  %v761_v44 = vcombine.low %v72_v32, %v76_v33 }
   0xc   :  { %v84_v41 = vld [vmem:[%s1105_s2 + $0x160] sm:$0xff]  ;;  %v85_v43 = vld [vmem:[%s1105_s2 + $0x168] sm:$0xff]  ;;  %v763_v45 = vcombine.low %v73_v34, %v77_v35 }
   0xd   :  { %v770_v46 = vcombine.high %v80_v40, %v84_v41  ;;  %v772_v47 = vcombine.high %v81_v42, %v85_v43  ;;  %v88_v48 = vld [vmem:[%s1105_s2 + $0x180] sm:$0xff]  ;;  %v89_v50 = vld [vmem:[%s1105_s2 + $0x188] sm:$0xff]  ;;  %v769_v52 = vcombine.low %v80_v40, %v84_v41  ;;  %v771_v53 = vcombine.low %v81_v42, %v85_v43 }
   0xe   :  { %429 = vmatpush1.bf16.msra.mxu0 %v745_v28  ;;  %470 = vmatpush1.bf16.msra.mxu1 %v747_v29  ;;  %v92_v49 = vld [vmem:[%s1105_s2 + $0x1a0] sm:$0xff]  ;;  %v93_v51 = vld [vmem:[%s1105_s2 + $0x1a8] sm:$0xff] }
   0xf   :  { %430 = vmatprep.subr.bf16.mxu0 %v754_v30  ;;  %471 = vmatprep.subr.bf16.mxu1 %v756_v31  ;;  %v778_v54 = vcombine.high %v88_v48, %v92_v49  ;;  %v959_v55 = vld [vmem:[%s1103_s0] sm:$0xff]  ;;  %v780_v56 = vcombine.high %v89_v50, %v93_v51 }
  0x10   :  { %v96_v57 = vld [vmem:[%s1105_s2 + $0x1c0] sm:$0xff]  ;;  %668 = vperm.xlu0 %802, %v959_v55  }
  0x11   :  { %v100_v58 = vld [vmem:[%s1105_s2 + $0x1e0] sm:$0xff] }
  0x12   :  { %431 = vmatpush1.bf16.msra.mxu0 %v753_v36  ;;  %472 = vmatpush1.bf16.msra.mxu1 %v755_v37 }
  0x13   :  { %432 = vmatprep.subr.bf16.mxu0 %v762_v38  ;;  %473 = vmatprep.subr.bf16.mxu1 %v764_v39 }
  0x16   :  { %433 = vmatpush1.bf16.msra.mxu0 %v761_v44  ;;  %474 = vmatpush1.bf16.msra.mxu1 %v763_v45 }
  0x17   :  { %434 = vmatprep.subr.bf16.mxu0 %v770_v46  ;;  %475 = vmatprep.subr.bf16.mxu1 %v772_v47 }
  0x18   :  { %9 = vsyncpa [#allocation4], 0  ;;  %v97_v59 = vld [vmem:[%s1105_s2 + $0x1c8] sm:$0xff]  ;;  %679 = vperm.xlu1 %804, %v959_v55   ;;  %v777_v61 = vcombine.low %v88_v48, %v92_v49  ;;  %v779_v62 = vcombine.low %v89_v50, %v93_v51  ;;  %v786_v63 = vcombine.high %v96_v57, %v100_v58  ;;  %v42_v1 = vld [vmem:[%s1105_s2 + $0x10] sm:$0xff]  ;;  %v837_v3 = vmov 1  }
  0x19   :  { %v101_v60 = vld [vmem:[%s1105_s2 + $0x1e8] sm:$0xff]  ;;  %v46_v2 = vld [vmem:[%s1105_s2 + $0x30] sm:$0xff]  ;;  %803 = vset.pattern.permute.xlu0 %v837_v3  ;;  %v43_v4 = vld [vmem:[%s1105_s2 + $0x18] sm:$0xff]  ;;  %v838_v6 = vmov 3   ;;  %v785_v7 = vcombine.low %v96_v57, %v100_v58  ;;  %v839_v16 = vmov 5   ;;  %v840_v19 = vmov 4  }
  0x1a   :  { %435 = vmatpush1.bf16.msra.mxu0 %v769_v52  ;;  %476 = vmatpush1.bf16.msra.mxu1 %v771_v53  ;;  %v788_v0 = vcombine.high %v97_v59, %v101_v60  ;;  %v47_v5 = vld [vmem:[%s1105_s2 + $0x38] sm:$0xff]  ;;  %v787_v9 = vcombine.low %v97_v59, %v101_v60  ;;  %v734_v10 = vcombine.high %v42_v1, %v46_v2  ;;  %v50_v12 = vld [vmem:[%s1105_s2 + $0x50] sm:$0xff]  ;;  %v1004_v17 = vld [vmem:[%s1104_s1] sm:$0xf]  ;;  %v841_v35 = vmov 6  }
  0x1b   :  { %436 = vmatprep.subr.bf16.mxu0 %v778_v54  ;;  %477 = vmatprep.subr.bf16.mxu1 %v780_v56  ;;  %v736_v11 = vcombine.high %v43_v4, %v47_v5  ;;  %v54_v13 = vld [vmem:[%s1105_s2 + $0x70] sm:$0xff]  ;;  %v51_v14 = vld [vmem:[%s1105_s2 + $0x58] sm:$0xff]  ;;  %v733_v18 = vcombine.low %v42_v1, %v46_v2  ;;  %v735_v20 = vcombine.low %v43_v4, %v47_v5  ;;  %v842_v41 = vmov 7  }
  0x1c   :  { %673 = vperm.xlu0 %803, %v959_v55   ;;  %805 = vset.pattern.permute.xlu1 %v838_v6  ;;  %v55_v15 = vld [vmem:[%s1105_s2 + $0x78] sm:$0xff]  ;;  %v742_v21 = vcombine.high %v50_v12, %v54_v13  ;;  %v58_v23 = vld [vmem:[%s1105_s2 + $0x90] sm:$0xff]  ;;  %v741_v27 = vcombine.low %v50_v12, %v54_v13 }
  0x1d   :  { %685 = vperm.xlu1 %805, %v959_v55   ;;  %v744_v22 = vcombine.high %v51_v14, %v55_v15  ;;  %v62_v24 = vld [vmem:[%s1105_s2 + $0xb0] sm:$0xff]  ;;  %v59_v25 = vld [vmem:[%s1105_s2 + $0x98] sm:$0xff]  ;;  %v743_v28 = vcombine.low %v51_v14, %v55_v15  ;;  %v615_v15 = vld [vmem:[%s1106_s3] sm:$0xff]  ;;  %s843_s3 = smov [#allocation3]  }
  0x1e   :  { %437 = vmatpush1.bf16.msra.mxu0 %v777_v61  ;;  %478 = vmatpush1.bf16.msra.mxu1 %v779_v62  ;;  %v63_v26 = vld [vmem:[%s1105_s2 + $0xb8] sm:$0xff]  ;;  %v750_v29 = vcombine.high %v58_v23, %v62_v24  ;;  %v66_v31 = vld [vmem:[%s1105_s2 + $0xd0] sm:$0xff]  ;;  %v749_v36 = vcombine.low %v58_v23, %v62_v24  ;;  %s721_s13 = sshll.u32 %s843_s3, 4  ;;  %s722_s13 = int_to_ptr.vmem [resolvable:$true] %s721_s13 }
  0x1f   :  { %438 = vmatprep.subr.bf16.mxu0 %v786_v63  ;;  %479 = vmatprep.subr.bf16.mxu1 %v788_v0  ;;  %v752_v30 = vcombine.high %v59_v25, %v63_v26  ;;  %v70_v32 = vld [vmem:[%s1105_s2 + $0xf0] sm:$0xff]  ;;  %v67_v33 = vld [vmem:[%s1105_s2 + $0xd8] sm:$0xff]  ;;  %v751_v37 = vcombine.low %v59_v25, %v63_v26  ;;  %s811_s14 = scalar_lea.vmem %s722_s13, 128  ;;  %p816_p1 = scmp.lt.s32.totalorder %s722_s13, %s722_s13 }
  0x20   :  { %807 = vset.pattern.permute.xlu0 %v839_v16  ;;  %v71_v34 = vld [vmem:[%s1105_s2 + $0xf8] sm:$0xff]  ;;  %v758_v38 = vcombine.high %v66_v31, %v70_v32  ;;  %v74_v40 = vld [vmem:[%s1105_s2 + $0x110] sm:$0xff]  ;;  %v757_v44 = vcombine.low %v66_v31, %v70_v32  ;;  %p812_p0 = scmp.ne.s32.totalorder %s722_s13, %s811_s14  ;;  %p817_p2 = scmp.lt.s32.totalorder %s811_s14, %s811_s14 }
  0x21   :  { %806 = vset.pattern.permute.xlu1 %v840_v19  ;;  %697 = vperm.xlu0 %807, %v959_v55   ;;  %v760_v39 = vcombine.high %v67_v33, %v71_v34  ;;  %v75_v42 = vld [vmem:[%s1105_s2 + $0x118] sm:$0xff]  ;;  %v759_v45 = vcombine.low %v67_v33, %v71_v34  ;;  %v82_v48 = vld [vmem:[%s1105_s2 + $0x150] sm:$0xff] }
  0x22   :  { %439 = vmatpush1.bf16.msra.mxu0 %v785_v7  ;;  %480 = vmatpush1.bf16.msra.mxu1 %v787_v9  ;;  %v79_v43 = vld [vmem:[%s1105_s2 + $0x138] sm:$0xff]  ;;  %v86_v49 = vld [vmem:[%s1105_s2 + $0x170] sm:$0xff]  ;;  %p818_p3 = por %p817_p2, %p816_p1 }
  0x23   :  { %506 = vmatprep.subr.bf16.mxu0 %v734_v10  ;;  %547 = vmatprep.subr.bf16.mxu1 %v736_v11  ;;  %v768_v47 = vcombine.high %v75_v42, %v79_v43  ;;  %v83_v50 = vld [vmem:[%s1105_s2 + $0x158] sm:$0xff]  ;;  %v767_v53 = vcombine.low %v75_v42, %v79_v43  ;;  %v774_v54 = vcombine.high %v82_v48, %v86_v49  ;;  %v94_v57 = vld [vmem:[%s1105_s2 + $0x1b0] sm:$0xff]  ;;  %v617_v11 = vlaneseq }
  0x24   :  { %691 = vperm.xlu1 %806, %v959_v55   ;;  %v87_v51 = vld [vmem:[%s1105_s2 + $0x178] sm:$0xff]  ;;  %v773_v60 = vcombine.low %v82_v48, %v86_v49  ;;  %v98_v0 = vld [vmem:[%s1105_s2 + $0x1d0] sm:$0xff]  ;;  %p819_p4 = pnand %p818_p3, %p812_p0 }
  0x25   :  { %457 = vmatmul.mubr.bf16.vlgmr.msra.gmra.mrb[0].mxu0 %v1004_v17  ;;  %498 = vmatmul.mubr.bf16.vlgmr.msra.gmra.mrb[0].mxu1 %v1004_v17  ;;  %v776_v56 = vcombine.high %v83_v50, %v87_v51  ;;  %v91_v58 = vld [vmem:[%s1105_s2 + $0x198] sm:$0xff]  ;;  %v775_v61 = vcombine.low %v83_v50, %v87_v51  ;;  %v102_v1 = vld [vmem:[%s1105_s2 + $0x1f0] sm:$0xff]  ;;  %v618_v12 = vshrl.u32 %v617_v11, 7 }
  0x26   :  { %507 = vmatpush1.bf16.msra.mxu0 %v733_v18  ;;  %548 = vmatpush1.bf16.msra.mxu1 %v735_v20  ;;  %v95_v59 = vld [vmem:[%s1105_s2 + $0x1b8] sm:$0xff]  ;;  %v790_v6 = vcombine.high %v98_v0, %v102_v1  ;;  %v789_v9 = vcombine.low %v98_v0, %v102_v1 }
  0x27   :  { %508 = vmatprep.subr.bf16.mxu0 %v742_v21  ;;  %549 = vmatprep.subr.bf16.mxu1 %v744_v22  ;;  %v784_v63 = vcombine.high %v91_v58, %v95_v59  ;;  %v99_v2 = vld [vmem:[%s1105_s2 + $0x1d8] sm:$0xff]  ;;  %v783_v5 = vcombine.low %v91_v58, %v95_v59  ;;  %v619_v14 = vsub.s32 0, %v618_v12  ;;  %v623_v16 = vsub.s32 1, %v618_v12 }
  0x28   :  { %538 = vmatprep.mubr.bf16.mxu0 %v835_v8  ;;  %579 = vmatprep.mubr.bf16.mxu1 %v835_v8  ;;  %v78_v8 = vld [vmem:[%s1105_s2 + $0x130] sm:$0xff]  ;;  %v103_v3 = vld [vmem:[%s1105_s2 + $0x1f8] sm:$0xff]  ;;  %v627_v18 = vsub.s32 2, %v618_v12  ;;  %v631_v20 = vsub.s32 3, %v618_v12  ;;  %v647_v49 = vsub.s32 7, %v618_v12 }
  0x29   :  { %808 = vset.pattern.permute.xlu1 %v841_v35  ;;  %810 = vset.pattern.permute.xlu0 %v842_v41  ;;  %v766_v46 = vcombine.high %v74_v40, %v78_v8  ;;  %v765_v52 = vcombine.low %v74_v40, %v78_v8  ;;  %v792_v7 = vcombine.high %v99_v2, %v103_v3 }
  0x2a   :  { %509 = vmatpush1.bf16.msra.mxu0 %v741_v27  ;;  %703 = vperm.xlu1 %808, %v959_v55   ;;  %v791_v10 = vcombine.low %v99_v2, %v103_v3  ;;  %v620_v21 = vrot.slane %v615_v15, %v619_v14  ;;  %v624_v22 = vrot.slane %v615_v15, %v623_v16 }
  0x2b   :  { %550 = vmatpush1.bf16.msra.mxu1 %v743_v28  ;;  %510 = vmatprep.subr.bf16.mxu0 %v750_v29  ;;  %v628_v23 = vrot.slane %v615_v15, %v627_v18  ;;  %v632_v25 = vrot.slane %v615_v15, %v631_v20  ;;  %v648_v58 = vrot.slane %v615_v15, %v647_v49 }
  0x2c   :  { %551 = vmatprep.subr.bf16.mxu1 %v752_v30 }
  0x2e   :  { %511 = vmatpush1.bf16.msra.mxu0 %v749_v36  ;;  %809 = vset.pattern.permute.xlu1 %v842_v41 }
  0x2f   :  { %552 = vmatpush1.bf16.msra.mxu1 %v751_v37  ;;  %512 = vmatprep.subr.bf16.mxu0 %v758_v38 }
  0x30   :  { %553 = vmatprep.subr.bf16.mxu1 %v760_v39  ;;  %709 = vperm.xlu1 %809, %v959_v55   ;;  %v90_v55 = vld [vmem:[%s1105_s2 + $0x190] sm:$0xff] }
  0x31   :  { %v782_v62 = vcombine.high %v90_v55, %v94_v57  ;;  %v781_v4 = vcombine.low %v90_v55, %v94_v57 }
  0x32   :  { %513 = vmatpush1.bf16.msra.mxu0 %v757_v44  ;;  %v635_v44 = vsub.s32 4, %v618_v12 }
  0x33   :  { %554 = vmatpush1.bf16.msra.mxu1 %v759_v45  ;;  %514 = vmatprep.subr.bf16.mxu0 %v766_v46  ;;  %v639_v46 = vsub.s32 5, %v618_v12 }
  0x34   :  { %555 = vmatprep.subr.bf16.mxu1 %v768_v47  ;;  %v643_v47 = vsub.s32 6, %v618_v12  ;;  %v636_v48 = vrot.slane %v615_v15, %v635_v44 }
  0x35   :  { %v640_v50 = vrot.slane %v615_v15, %v639_v46 }
  0x36   :  { %515 = vmatpush1.bf16.msra.mxu0 %v765_v52  ;;  %v644_v51 = vrot.slane %v615_v15, %v643_v47 }
  0x37   :  { %556 = vmatpush1.bf16.msra.mxu1 %v767_v53  ;;  %516 = vmatprep.subr.bf16.mxu0 %v774_v54 }
  0x38   :  { %557 = vmatprep.subr.bf16.mxu1 %v776_v56 }
  0x3a   :  { %517 = vmatpush1.bf16.msra.mxu0 %v773_v60 }
  0x3b   :  { %558 = vmatpush1.bf16.msra.mxu1 %v775_v61  ;;  %518 = vmatprep.subr.bf16.mxu0 %v782_v62 }
  0x3c   :  { %559 = vmatprep.subr.bf16.mxu1 %v784_v63 }
  0x3e   :  { %519 = vmatpush1.bf16.msra.mxu0 %v781_v4 }
  0x3f   :  { %560 = vmatpush1.bf16.msra.mxu1 %v783_v5  ;;  %520 = vmatprep.subr.bf16.mxu0 %v790_v6 }
  0x40   :  { %561 = vmatprep.subr.bf16.mxu1 %v792_v7 }
  0x42   :  { %521 = vmatpush1.bf16.msra.mxu0 %v789_v9 }
  0x43   :  { %562 = vmatpush1.bf16.msra.mxu1 %v791_v10 }
  0x45   :  { %539 = vmatmul.mubr.bf16.vlgmr.msra.gmra.mrb[4].mxu0 %v1004_v17 }
  0x46   :  { %580 = vmatmul.mubr.bf16.vlgmr.msra.gmra.mrb[4].mxu1 %v1004_v17 }
  0x8f   :  { %v669_v13 = vpop.permute.xlu0 %668 }
  0x97   :  { %v680_v19 = vpop.permute.xlu1 %679 }
  0x9b   :  { %v674_v24 = vpop.permute.xlu0 %673 }
  0x9c   :  { %v686_v27 = vpop.permute.xlu1 %685 }
  0xa0   :  { %v698_v52 = vpop.permute.xlu0 %697 }
  0xa3   :  { %v692_v45 = vpop.permute.xlu1 %691 }
  0xa9   :  { %v704_v54 = vpop.permute.xlu1 %703 }
  0xaf   :  { %v710_v6 = vpop.permute.xlu1 %709 }
  0xf8   :  { %v458_v26 = vpop.f32.mrb[0].mxu0  ;;  %v499_v29 = vpop.f32.mrb[0].mxu1 }
  0xf9   :  { %v657_v17 = vadd.f32 %v620_v21, %v458_v26  ;;  %v460_v28 = vpop.f32.mrb[1].mxu0  ;;  %v659_v32 = vadd.f32 %v628_v23, %v499_v29  ;;  %v501_v33 = vpop.f32.mrb[1].mxu1 }
  0xfa   :  { %v658_v30 = vadd.f32 %v624_v22, %v460_v28  ;;  %v462_v31 = vpop.f32.mrb[2].mxu0  ;;  %v660_v36 = vadd.f32 %v632_v25, %v501_v33  ;;  %v503_v37 = vpop.f32.mrb[2].mxu1 }
  0xfb   :  { %v671_v34 = vmul.f32 %v669_v13, %v657_v17  ;;  %v463_v35 = vpop.f32.mrb[3].mxu0  ;;  %v682_v38 = vmul.f32 %v680_v19, %v659_v32  ;;  %v504_v40 = vpop.f32.mrb[3].mxu1 }
  0xfc   :  { %v676_v39 = vmul.f32 %v674_v24, %v658_v30  ;;  %v688_v41 = vmul.f32 %v686_v27, %v660_v36 }
  0xfe   :  { %v677_v8 = vadd.f32 %v676_v39, %v671_v34 }
 0x100   :  { %v683_v42 = vadd.f32 %v682_v38, %v677_v8 }
 0x102   :  { %v689_v43 = vadd.f32 %v688_v41, %v683_v42 }
 0x118   :  { %v540_v53 = vpop.f32.mrb[4].mxu0 }
 0x119   :  { %v661_v56 = vadd.f32 %v636_v48, %v540_v53  ;;  %v542_v55 = vpop.f32.mrb[5].mxu0  ;;  %v581_v57 = vpop.f32.mrb[4].mxu1 }
 0x11a   :  { %v662_v59 = vadd.f32 %v640_v50, %v542_v55  ;;  %v544_v60 = vpop.f32.mrb[6].mxu0  ;;  %v583_v61 = vpop.f32.mrb[5].mxu1  ;;  %v663_v63 = vadd.f32 %v644_v51, %v581_v57 }
 0x11b   :  { %v694_v62 = vmul.f32 %v692_v45, %v661_v56  ;;  %v545_v0 = vpop.f32.mrb[7].mxu0  ;;  %v585_v1 = vpop.f32.mrb[6].mxu1  ;;  %v664_v4 = vadd.f32 %v648_v58, %v583_v61 }
 0x11c   :  { %v700_v2 = vmul.f32 %v698_v52, %v662_v59  ;;  %v586_v3 = vpop.f32.mrb[7].mxu1  ;;  %v706_v7 = vmul.f32 %v704_v54, %v663_v63 }
 0x11d   :  { %v695_v5 = vadd.f32 %v694_v62, %v689_v43  ;;  %v712_v10 = vmul.f32 %v710_v6, %v664_v4 }
 0x11f   :  { %v701_v9 = vadd.f32 %v700_v2, %v695_v5 }
 0x121   :  { %v707_v11 = vadd.f32 %v706_v7, %v701_v9 }
 0x123   :  { %v713_v12 = vadd.f32 %v712_v10, %v707_v11 }
 0x125   :  { %714 = vst [vmem:[#allocation3] sm:$0xff] %v713_v12 }
 0x126   :  { %822 = shalt.err (!%p819_p4)
}
 0x127   :  { %s823_s17 = scalar_lea.hbm %s1107_s4, 128 }
 0x128   :  { %p824_p5 = scmp.ne.s32.totalorder %s1107_s4, %s823_s17  ;;  %p827_p6 = scmp.lt.u32.totalorder %s823_s17, %s1107_s4 }
 0x12a   :  { %p829_p7 = pnand %p827_p6, %p824_p5 }
 0x12c   :  { %832 = shalt.err (!%p829_p7)
}
 0x12d   :  { %724 = dma.vmem_to_hbm [thread:$0]  %s722_s13, 128, %s1107_s4, [#allocation4]  }
 0x12e   :  { %833 = dma.done.wait [#allocation4], 128  }
 0x12f   :  { %834 = vsyncadd [#allocation4], 4294967168 }
 0x130   :  { %728 = vsyncpa [#allocation4], 1 }

</bundles_post_ra>
